<compile_context>
chip_gen: v5e
topology: v5e:2x2
jax: 0.10.0
libtpu: 0.0.40
codegen_flags: <defaults>
</compile_context>

<pallas_src>
import jax
import jax.numpy as jnp
from jax.experimental import pallas as pl
from jax.experimental.pallas import tpu as pltpu


POINTS_PER_ROW = 128                  # points packed per reshaped row (aligned path)
LANES = POINTS_PER_ROW * 3            # 384 lanes = multiple of 128, lane-dense
_FLAT_BLOCK = 384 * 256               # ragged-path 1-D block (multiple of 128 and 3)
_VMEM_LIMIT = 32 * 1024 * 1024        # safe on v5e/v6e (128 MiB phys) and v7x (64 MiB)


def _scale_kernel(s_ref, x_ref, o_ref):
    """s_ref : VMEM scale pattern ((1,384) or (blk,)) -- gate pre-folded, fetched once
       x_ref : VMEM points tile ((tr,384) or (blk,))
       o_ref : VMEM output tile (same shape as x_ref)
    """
    o_ref[...] = x_ref[...] * s_ref[...]


def _compiler_params():
    # TODO(synk): on v7x consider pltpu.CORE_PARALLEL if "parallel" alone does
    # not shard the 1-D grid across both TensorCores.
    return pltpu.CompilerParams(
        dimension_semantics=("parallel",),
        vmem_limit_bytes=_VMEM_LIMIT,
    )


def random_scale_point_cloud(xyz, key, *, scale_low=0.8, scale_high=1.2,
                             prob=0.95, tile_rows=1024, donate=False):
    """JAX/Pallas equivalent of the PyTorch module's forward() for Nx3 input."""
    N, C = xyz.shape
    if C != 3:
        raise ValueError("random_scale_point_cloud expects Nx3 point clouds")

    # --- RNG glue (torch.rand([]) gate + torch.rand([3]) scales) -----------
    k_gate, k_scale = jax.random.split(key)
    apply_flag = jax.random.uniform(k_gate, ()) < prob
    scales3 = jax.random.uniform(k_scale, (3,), dtype=jnp.float32) \
        * (scale_high - scale_low) + scale_low
    # Fold the probability gate into the scales (multiply-by-1.0 == identity,
    # preserves -0.0 / NaN bit patterns).
    scales3 = jnp.where(apply_flag, scales3, jnp.ones((3,), jnp.float32))
    scales3 = scales3.astype(xyz.dtype)

    # Only alias input->output when the caller actually donates the buffer;
    # otherwise XLA would insert a defensive copy (an extra HBM pass).
    io_alias = {1: 0} if donate else {}

    if N % POINTS_PER_ROW == 0:
        # -------- fast lane-dense 2-D path (no pad, no slice) --------------
        rows = N // POINTS_PER_ROW
        x2 = xyz.reshape(rows, LANES)                    # free row-major view

        itemsize = jnp.dtype(xyz.dtype).itemsize
        sub = max(8, 32 // itemsize)                     # 8 f32, 16 bf16, 32 int8/fp8
        tr = min(tile_rows, rows)
        if tr < rows:
            tr = max(sub, (tr // sub) * sub)

        scale_row = jnp.tile(scales3, POINTS_PER_ROW).reshape(1, LANES)

        out2 = pl.pallas_call(
            _scale_kernel,
            out_shape=jax.ShapeDtypeStruct((rows, LANES), xyz.dtype),
            grid=(pl.cdiv(rows, tr),),
            in_specs=[pl.BlockSpec((1, LANES), lambda i: (0, 0)),   # scales: fetched once
                      pl.BlockSpec((tr, LANES), lambda i: (i, 0))],
            out_specs=pl.BlockSpec((tr, LANES), lambda i: (i, 0)),
            compiler_params=_compiler_params(),
            input_output_aliases=io_alias,
        )(scale_row, x2)
        return out2.reshape(N, 3)

    # -------- ragged path: flat (3N,) view, Pallas masks the edge block ----
    total = 3 * N
    flat = xyz.reshape(total)                            # free row-major view
    if total <= _FLAT_BLOCK:
        blk = total                                      # full extent -> single block
    else:
        blk = _FLAT_BLOCK                                # multiple of 384 (and 128)
    scale_flat = jnp.tile(scales3, blk // 3)             # <= 384 KiB, fetched once

    out_flat = pl.pallas_call(
        _scale_kernel,
        out_shape=jax.ShapeDtypeStruct((total,), xyz.dtype),
        grid=(pl.cdiv(total, blk),),
        in_specs=[pl.BlockSpec((blk,), lambda i: (0,)),
                  pl.BlockSpec((blk,), lambda i: (i,))],
        out_specs=pl.BlockSpec((blk,), lambda i: (i,)),
        compiler_params=_compiler_params(),
        input_output_aliases=io_alias,
    )(scale_flat, flat)
    return out_flat.reshape(N, 3)


def _reference(xyz, key, scale_low=0.8, scale_high=1.2, prob=0.95):
    """Pure-JAX reference with identical RNG usage."""
    k_gate, k_scale = jax.random.split(key)
    apply_flag = jax.random.uniform(k_gate, ()) < prob
    sc = jax.random.uniform(k_scale, (3,), dtype=jnp.float32) \
        * (scale_high - scale_low) + scale_low
    sc = jnp.where(apply_flag, sc, jnp.ones((3,), jnp.float32))
    return (xyz * sc[None, :].astype(xyz.dtype)).astype(xyz.dtype)


if __name__ == "__main__":
    key = jax.random.PRNGKey(0)
    k_data_a, k_data_b, k_aug_a, k_aug_b = jax.random.split(key, 4)

    # Case 1: N divisible by 128 -> lane-dense 2-D path (no pad / slice).
    xyz_a = jax.random.normal(k_data_a, (256, 3), dtype=jnp.float32)
    out_a = jax.block_until_ready(random_scale_point_cloud(xyz_a, k_aug_a))
    ref_a = _reference(xyz_a, k_aug_a)
    assert out_a.shape == xyz_a.shape and out_a.dtype == xyz_a.dtype
    assert jnp.allclose(out_a, ref_a, atol=1e-6, rtol=1e-6)

    # Case 2: ragged N -> flat 1-D path (Pallas masks the edge block).
    xyz_b = jax.random.normal(k_data_b, (200, 3), dtype=jnp.float32)
    out_b = jax.block_until_ready(random_scale_point_cloud(xyz_b, k_aug_b))
    ref_b = _reference(xyz_b, k_aug_b)
    assert out_b.shape == xyz_b.shape and out_b.dtype == xyz_b.dtype
    assert jnp.allclose(out_b, ref_b, atol=1e-6, rtol=1e-6)

    print("KERNEL_OK")
</pallas_src>

<mosaic_0001>
module attributes {stable_mosaic.version = 11 : i64} {
  func.func @_scale_kernel(%arg0: i32, %arg1: memref<1x384xf32, #tpu.memory_space<vmem>>, %arg2: memref<2x384xf32, #tpu.memory_space<vmem>>, %arg3: memref<2x384xf32, #tpu.memory_space<vmem>>) attributes {dimension_semantics = [#tpu.dimension_semantics<parallel>], iteration_bounds = array<i64: 1>, scalar_prefetch = 0 : i64, scratch_operands = 0 : i64, tpu.core_type = #tpu.core_type<tc>, window_params = [{pipeline_mode = #tpu.pipeline_mode<synchronous>, transform_indices = @transform_0, window_bounds = array<i64: 1, 384>}, {transform_indices = @transform_1, window_bounds = array<i64: 2, 384>}, {transform_indices = @transform_2, window_bounds = array<i64: 2, 384>}]} {
    %c0 = arith.constant 0 : index
    %c0_0 = arith.constant 0 : index
    %0 = vector.load %arg2[%c0, %c0_0] : memref<2x384xf32, #tpu.memory_space<vmem>>, vector<2x384xf32>
    %c0_1 = arith.constant 0 : index
    %c0_2 = arith.constant 0 : index
    %1 = vector.load %arg1[%c0_1, %c0_2] : memref<1x384xf32, #tpu.memory_space<vmem>>, vector<1x384xf32>
    %2 = vector.broadcast %1 : vector<1x384xf32> to vector<2x384xf32>
    %3 = arith.mulf %0, %2 : vector<2x384xf32>
    %c0_3 = arith.constant 0 : index
    %c0_4 = arith.constant 0 : index
    %4 = vector.load %arg3[%c0_3, %c0_4] : memref<2x384xf32, #tpu.memory_space<vmem>>, vector<2x384xf32>
    tpu.vector_store %arg3[%c0_3, %c0_4], %3 {strides = array<i32>} : memref<2x384xf32, #tpu.memory_space<vmem>>, vector<2x384xf32>,
    return
  }
  func.func @transform_0(%arg0: i32) -> (i32, i32) {
    %c0_i32 = arith.constant 0 : i32
    %c0_i32_0 = arith.constant 0 : i32
    %c0_i32_1 = arith.constant 0 : i32
    return %c0_i32, %c0_i32_0 : i32, i32
  }
  func.func @transform_1(%arg0: i32) -> (i32, i32) {
    %c0_i32 = arith.constant 0 : i32
    %c0_i32_0 = arith.constant 0 : i32
    return %arg0, %c0_i32 : i32, i32
  }
  func.func @transform_2(%arg0: i32) -> (i32, i32) {
    %c0_i32 = arith.constant 0 : i32
    %c0_i32_0 = arith.constant 0 : i32
    return %arg0, %c0_i32 : i32, i32
  }
}

</mosaic_0001>

<bundles_post_ra>
// kernel: tpu_custom_call.1
= control target key start
LH: loop header
LB: loop body
LE: loop exit
PB: predicated region body
PF: predicated region fallthrough
CT: control target
= control target key end

     0   :  { %7 = vsyncpa [#allocation3], 0  ;;  %s181_s0 = inlined_call_operand.hbm [shape: f32[1,384], index: 0, kind: input, shape index: {}]   ;;  %s182_s1 = inlined_call_operand.hbm [shape: f32[2,384], index: 1, kind: input, shape index: {}]   ;;  %s183_s2 = inlined_call_operand.hbm [shape: f32[2,384], index: 2, kind: output, shape index: {}]  }
   0x1   :  { %8 = vsyncpa [#allocation6], 0 }
   0x2   :  { %9 = vsyncpa [#allocation4], 0  ;;  %s15_s11 = sshll.u32 %s181_s0, 4  ;;  %s154_s12 = smov [#allocation2]   ;;  %s16_s11 = int_to_ptr.hbm [resolvable:$true] %s15_s11 }
   0x3   :  { %s17_s13 = sshll.u32 %s154_s12, 4  ;;  %s26_s16 = sshll.u32 %s182_s1, 4  ;;  %s18_s13 = int_to_ptr.vmem [resolvable:$true] %s17_s13  ;;  %s27_s16 = int_to_ptr.hbm [resolvable:$true] %s26_s16 }
   0x4   :  { %20 = dma.hbm_to_vmem [thread:$0]  %s16_s11, 48, %s18_s13, [#allocation3]  }
   0x5   :  { %s155_s17 = smov [#allocation5]  }
   0x6   :  { %s28_s18 = sshll.u32 %s155_s17, 4  ;;  %s29_s18 = int_to_ptr.vmem [resolvable:$true] %s28_s18 }
   0x7   :  { %31 = dma.hbm_to_vmem [thread:$0]  %s27_s16, 96, %s29_s18, [#allocation6]  }
   0x8   :  { %148 = dma.done.wait [#allocation3], 48  }
   0x9   :  { %149 = vsyncadd [#allocation3], 4294967248 }
   0xa   :  { %150 = dma.done.wait [#allocation6], 96  }
   0xb   :  { %151 = vsyncadd [#allocation6], 4294967200  ;;  %v41_v0 = vld [vmem:[#allocation2] sm:$0x7]  ;;  %vm48_vm0 = vcmask 1041408   ;;  %vm50_vm1 = vcmask 1043456  }
   0xc   :  { %v43_v1 = vperm.slane %v41_v0, 0  ;;  %v44_v2 = vperm.slane %v41_v0, 1  ;;  %v45_v3 = vperm.slane %v41_v0, 2  ;;  %v40_v6 = vld [vmem:[#allocation5] sm:$0x3f]  ;;  %s156_s0 = smov [#allocation7]  }
   0xd   :  { %s60_s1 = sshll.u32 %s156_s0, 4  ;;  %s62_s21 = sshll.u32 %s183_s2, 4  ;;  %s61_s1 = int_to_ptr.vmem [resolvable:$true] %s60_s1  ;;  %s63_s21 = int_to_ptr.hbm [resolvable:$true] %s62_s21 }
   0xe   :  { %v46_v4 = vrot.slane %v44_v2, 6  ;;  %v47_v5 = vrot.slane %v45_v3, 4 }
  0x10   :  { %v49_v7 = vsel %vm48_vm0, %v43_v1, %v46_v4 }
  0x11   :  { %v51_v8 = vsel %vm50_vm1, %v49_v7, %v47_v5 }
  0x12   :  { %v53_v9 = vmul.f32 %v51_v8, %v40_v6 }
  0x14   :  { %54 = vst [vmem:[#allocation7] sm:$0x3f] %v53_v9 }
  0x15   :  { %65 = dma.vmem_to_hbm [thread:$0]  %s61_s1, 96, %s63_s21, [#allocation4]  }
  0x16   :  { %152 = dma.done.wait [#allocation4], 96  }
  0x17   :  { %153 = vsyncadd [#allocation4], 4294967200 }
  0x18   :  { %70 = vsyncpa [#allocation3], 1 }
  0x19   :  { %71 = vsyncpa [#allocation6], 1 }
  0x1a   :  { %72 = vsyncpa [#allocation4], 1 }

</bundles_post_ra>
